<compile_context>
chip_gen: v6e
topology: v6e:2x2x1
jax: 0.10.0
libtpu: 0.0.40
codegen_flags: <defaults>
</compile_context>

<pallas_src>
import jax
import jax.numpy as jnp
from jax.experimental import pallas as pl
from jax.experimental.pallas import tpu as pltpu


def _round_up(v, m):
    return (v + m - 1) // m * m


def _skip_linear_kernel(x_ref, w_ref, b_ref, o_ref):
    # x_ref: (TM, H_in)  w_ref: (H_in, H_out)  b_ref: (1, H_out)  o_ref: (TM, H_out)
    n = o_ref.shape[-1]
    # MXU matmul with native operand dtype, f32 accumulation.
    y = jnp.dot(x_ref[...], w_ref[...], preferred_element_type=jnp.float32)
    # Skip path: only the leading (TM, n) slice of x (static slice, n <= H_in).
    skip = x_ref[:, :n].astype(jnp.float32)
    bias = b_ref[...].astype(jnp.float32)
    o_ref[...] = (skip + y + bias).astype(o_ref.dtype)


def skip_connection_linear(x, w, b, *, tm=512):
    """SkipConnection with Linear inner: x[..., :H_out] + (x @ w + b).

    x: (B, S, H_in), w: (H_in, H_out), b: (H_out,) -> (B, S, H_out).
    """
    B, S, H_in = x.shape
    K, H_out = w.shape
    assert K == H_in
    assert H_out <= H_in, "skip slice requires out_features <= in_features"

    M = B * S
    x2d = x.reshape(M, H_in)          # no padding: x's K block spans full H_in
    b2d = b.reshape(1, H_out)

    itemsize = jnp.dtype(x.dtype).itemsize

    # ---- M-tile selection --------------------------------------------------
    # Sublane-aligned (multiple of 8).  Ensure >= 2 M tiles so the "parallel"
    # grid axis can be sharded across both v7x TensorCores, then shrink until
    # the VMEM footprint fits a v7x-safe (~48 MiB of 64 MiB) budget.
    TM = min(tm, _round_up(M, 8))
    if M > 8:
        TM = min(TM, _round_up(pl.cdiv(M, 2), 8))
    TM = max(8, TM // 8 * 8)

    def vmem_bytes(tm_):
        return (2 * tm_ * H_in            # x tiles, double-buffered
                + 2 * tm_ * H_out         # out tiles, double-buffered
                + H_in * H_out + H_out    # resident W and b (Buffered(1))
                ) * itemsize

    V7X_SAFE_BUDGET = 48 * 1024 * 1024
    while TM > 8 and vmem_bytes(TM) > V7X_SAFE_BUDGET:
        TM = max(8, (TM // 2) // 8 * 8)
    # TODO(synk): if the resident W alone exceeds the budget (very large
    # H_in*H_out), add a K/N-tiled variant with an f32 VMEM accumulator
    # (K as trailing "arbitrary" grid axis + pl.when init/finalize).

    grid = (pl.cdiv(M, TM),)

    vmem_limit = min(100 * 1024 * 1024,
                     max(32 * 1024 * 1024, int(vmem_bytes(TM) * 1.3) + (4 << 20)))

    cost = pl.CostEstimate(
        flops=2 * M * H_in * H_out,
        transcendentals=0,
        bytes_accessed=(M * H_in + H_in * H_out + H_out + M * H_out) * itemsize,
    )

    out2d = pl.pallas_call(
        _skip_linear_kernel,
        out_shape=jax.ShapeDtypeStruct((M, H_out), x.dtype),
        grid_spec=pltpu.PrefetchScalarGridSpec(
            num_scalar_prefetch=0,
            grid=grid,
            in_specs=[
                # x: tiled along M, full K (block dim == full H_in, so no 128
                # padding needed); auto double-buffered by Pallas.
                pl.BlockSpec((TM, H_in), lambda i: (i, 0)),
                # W, b: grid-invariant -> stay resident in VMEM; single-buffer
                # them (double-buffering a constant block only wastes VMEM).
                pl.BlockSpec((H_in, H_out), lambda i: (0, 0),
                             pipeline_mode=pl.Buffered(1)),
                pl.BlockSpec((1, H_out), lambda i: (0, 0),
                             pipeline_mode=pl.Buffered(1)),
            ],
            # Output at its natural (M, H_out) shape: no padded-N slab and no
            # post-call slice (saves a full HBM pass).  A non-128-multiple
            # H_out just means masked stores on the last lane group.
            out_specs=pl.BlockSpec((TM, H_out), lambda i: (i, 0)),
        ),
        compiler_params=pltpu.CompilerParams(
            # M tiles are fully independent -> shard across v7x's two cores.
            dimension_semantics=("parallel",),
            vmem_limit_bytes=vmem_limit,
        ),
        cost_estimate=cost,
    )(x2d, w, b2d)

    return out2d.reshape(B, S, H_out)


if __name__ == "__main__":
    key = jax.random.PRNGKey(0)
    k_x, k_w, k_b = jax.random.split(key, 3)

    B, S, H_in, H_out = 2, 8, 32, 16

    x = jax.random.normal(k_x, (B, S, H_in), dtype=jnp.float32)
    # deterministic synthetic parameters for the inner Linear(H_in -> H_out)
    w = jax.random.normal(k_w, (H_in, H_out), dtype=jnp.float32) * 0.05
    b = jax.random.normal(k_b, (H_out,), dtype=jnp.float32) * 0.05

    out = skip_connection_linear(x, w, b)
    out = jax.block_until_ready(out)

    # reference check (plain JAX): x[..., :H_out] + (x @ w + b)
    ref = x[..., :H_out] + (jnp.einsum("bsh,hn->bsn", x, w) + b)
    assert out.shape == (B, S, H_out)
    assert jnp.allclose(out, ref, atol=1e-5, rtol=1e-5)

    print("KERNEL_OK")
</pallas_src>

<mosaic_0001>
module attributes {stable_mosaic.version = 11 : i64} {
  func.func @_skip_linear_kernel(%arg0: i32, %arg1: memref<8x32xf32, #tpu.memory_space<vmem>>, %arg2: memref<32x16xf32, #tpu.memory_space<vmem>>, %arg3: memref<1x16xf32, #tpu.memory_space<vmem>>, %arg4: memref<8x16xf32, #tpu.memory_space<vmem>>) attributes {dimension_semantics = [#tpu.dimension_semantics<parallel>], iteration_bounds = array<i64: 2>, scalar_prefetch = 0 : i64, scratch_operands = 0 : i64, tpu.core_type = #tpu.core_type<tc>, window_params = [{transform_indices = @transform_0, window_bounds = array<i64: 8, 32>}, {pipeline_mode = #tpu.pipeline_mode<synchronous>, transform_indices = @transform_1, window_bounds = array<i64: 32, 16>}, {pipeline_mode = #tpu.pipeline_mode<synchronous>, transform_indices = @transform_2, window_bounds = array<i64: 1, 16>}, {transform_indices = @transform_3, window_bounds = array<i64: 8, 16>}]} {
    %c0 = arith.constant 0 : index
    %c0_0 = arith.constant 0 : index
    %0 = vector.load %arg1[%c0, %c0_0] : memref<8x32xf32, #tpu.memory_space<vmem>>, vector<8x32xf32>
    %c0_1 = arith.constant 0 : index
    %c0_2 = arith.constant 0 : index
    %1 = vector.load %arg2[%c0_1, %c0_2] : memref<32x16xf32, #tpu.memory_space<vmem>>, vector<32x16xf32>
    %cst = arith.constant dense<0.000000e+00> : vector<8x16xf32>
    %2 = tpu.matmul %0, %1, %cst {dimension_numbers = #tpu.dot_dimension_numbers<[1], [0], [0], [1], [0, 0, 1, 1], [], []>} : vector<8x32xf32>, vector<32x16xf32>, vector<8x16xf32> -> vector<8x16xf32>
    %c0_3 = arith.constant 0 : index
    %c0_4 = arith.constant 0 : index
    %3 = vector.load %arg1[%c0_3, %c0_4] : memref<8x32xf32, #tpu.memory_space<vmem>>, vector<8x16xf32>
    %c0_5 = arith.constant 0 : index
    %c0_6 = arith.constant 0 : index
    %4 = vector.load %arg3[%c0_5, %c0_6] : memref<1x16xf32, #tpu.memory_space<vmem>>, vector<1x16xf32>
    %5 = arith.addf %3, %2 : vector<8x16xf32>
    %6 = vector.broadcast %4 : vector<1x16xf32> to vector<8x16xf32>
    %7 = arith.addf %5, %6 : vector<8x16xf32>
    %c0_7 = arith.constant 0 : index
    %c0_8 = arith.constant 0 : index
    %8 = vector.load %arg4[%c0_7, %c0_8] : memref<8x16xf32, #tpu.memory_space<vmem>>, vector<8x16xf32>
    tpu.vector_store %arg4[%c0_7, %c0_8], %7 {strides = array<i32>} : memref<8x16xf32, #tpu.memory_space<vmem>>, vector<8x16xf32>,
    return
  }
  func.func @transform_0(%arg0: i32) -> (i32, i32) {
    %c0_i32 = arith.constant 0 : i32
    %c0_i32_0 = arith.constant 0 : i32
    return %arg0, %c0_i32 : i32, i32
  }
  func.func @transform_1(%arg0: i32) -> (i32, i32) {
    %c0_i32 = arith.constant 0 : i32
    %c0_i32_0 = arith.constant 0 : i32
    %c0_i32_1 = arith.constant 0 : i32
    return %c0_i32, %c0_i32_0 : i32, i32
  }
  func.func @transform_2(%arg0: i32) -> (i32, i32) {
    %c0_i32 = arith.constant 0 : i32
    %c0_i32_0 = arith.constant 0 : i32
    %c0_i32_1 = arith.constant 0 : i32
    return %c0_i32, %c0_i32_0 : i32, i32
  }
  func.func @transform_3(%arg0: i32) -> (i32, i32) {
    %c0_i32 = arith.constant 0 : i32
    %c0_i32_0 = arith.constant 0 : i32
    return %arg0, %c0_i32 : i32, i32
  }
}

</mosaic_0001>

<bundles_post_ra>
// kernel: tpu_custom_call.1
= control target key start
LH: loop header
LB: loop body
LE: loop exit
PB: predicated region body
PF: predicated region fallthrough
CT: control target
= control target key end

     0   :  { %8 = vsyncpa [#allocation3], 0  ;;  %s585_s0 = inlined_call_operand.vmem [shape: f32[16,32], index: 0, kind: input, shape index: {}]   ;;  %s586_s1 = inlined_call_operand.vmem [shape: f32[32,16], index: 1, kind: input, shape index: {}]   ;;  %s587_s2 = inlined_call_operand.vmem [shape: f32[1,16], index: 2, kind: input, shape index: {}]   ;;  %s588_s3 = inlined_call_operand.hbm [shape: f32[16,16], index: 3, kind: output, shape index: {}]  }
   0x1   :  { %10 = vsyncpa [#allocation3 + $0x1], 0  ;;  %s483_s12 = smov 0   ;;  %s485_s13 = smov 0  }
   0x2   :  { %s487_s14 = smov 0   ;;  %s489_s15 = smov 0  }
   0x3 LB: > { %s504_s16 = sadd.s32 4294967295, %s458_s15   ;;  %s329_s17 = sadd.s32 4294967294, %s458_s15   ;;  %s458_s15 = sphi %s489_s15, %s594_s15   ;;  %s454_s14 = sphi %s487_s14, %s593_s14   ;;  %s450_s13 = sphi %s485_s13, %s592_s13   ;;  %s446_s12 = sphi %s483_s12, %s591_s12  }
   0x4   : > { %s508_s18 = sadd.s32 1, %s458_s15   ;;  %s91_s19 = sadd.s32 1, %s454_s14 }
   0x5   : > { %s88_s20 = ssub.s32 %s458_s15, %s508_s18  ;;  %p101_p0 = scmp.ne.s32.totalorder %s454_s14, %s450_s13 }
   0x6   : > { %p89_p1 = scmp.eq.s32.totalorder %s88_s20, 0  ;;  %p102_p2 = scmp.eq.s32.totalorder %s504_s16, 1 }
   0x7   : > { %p107_p3 = scmp.ne.s32.totalorder %s450_s13, %s446_s12  ;;  %p108_p4 = scmp.eq.s32.totalorder %s329_s17, 1 }
   0x8   : > { %s519_s21 = scalar_select %p89_p1, %s454_s14, %s91_s19  }
   0x9   : > { %p521_p5 = por %p102_p2, %p101_p0  ;;  %p525_p6 = por %p108_p4, %p107_p3 }
   0xa   : > { %p332_p7 = scmp.ge.s32.totalorder %s458_s15, 1  ;;  %p139_p8 = scmp.lt.s32.totalorder %s458_s15, 3 }
   0xc   : > { %p140_p9 = pnand %p332_p7, %p139_p8 }
   0xd   : > { %p162_p10 = scmp.lt.s32.totalorder (!%p140_p9), %s504_s16, 1  ;;  %s159_s10 = sand.u32 (!%p140_p9), 1, %s450_s13  }
   0xe   : > { %143 = sbr.rel (%p140_p9) target bundleno = 238 (0xee), region = 32  ;;  %s333_s11 = sshll.u32 (!%p140_p9), %s159_s10, 3 }
   0xf   : > { %s338_s20 = sshll.u32 (!%p140_p9), %s504_s16, 7  ;;  %s161_s24 = scalar_lea.vmem (!%p140_p9), [#allocation2], %s333_s11 }
  0x10   : > { %s270_s25 = sshll.u32 (!%p140_p9), %s161_s24, 4  ;;  %s257_s29 = scalar_lea.sflag (!%p140_p9), [#allocation3], %s159_s10  ;;  %s271_s25 = int_to_ptr.vmem [resolvable:$true] %s270_s25 }
  0x11   : > { %s398_s30 = scalar_lea.vmem (!%p140_p9), %s271_s25, 128 }
  0x12   : > { %p399_p11 = scmp.ne.s32.totalorder (!%p140_p9), %s271_s25, %s398_s30 }
  0x13   : > { %v170_v0 = vld [vmem:[%s586_s1 + $0x18] sm:$0xff]  ;;  %v460_v1 = vmov 0.0   ;;  %v169_v2 = vld [vmem:[%s586_s1 + $0x10] sm:$0xff]  ;;  %vm461_vm0 = vmmov 0   ;;  %s163_s28 = scalar_select %p162_p10, %s504_s16, 1  ;;  %v168_v3 = vld [vmem:[%s586_s1 + $0x8] sm:$0xff] }
  0x14   : > { %346 = vmatprep.subr.mxu0 %v460_v1  ;;  %354 = vmatprep.mubr.msk.f32.mxu0 %vm461_vm0, %v460_v1  ;;  %v167_v4 = vld [vmem:[%s586_s1] sm:$0xff]  ;;  %vm171_vm1 = vcmask 261120   ;;  %vm254_vm2 = vcmask 130048   ;;  %p400_p12 = pnand %p399_p11, %p521_p5 }
  0x15   : > { %347 = vmatpush3.msra.mxu0 %v170_v0  ;;  %s334_s4 = sshll.u32 %s163_s28, 3  ;;  %v336_v7 = vld [vmem:[%s587_s2] ss:$0 sm:$0xff]  ;;  %s268_s28 = scalar_lea.hbm %s588_s3, %s338_s20 }
  0x16   : > { %348 = vmatprep.subr.mxu0 %v460_v1  ;;  %s165_s9 = scalar_lea.vmem %s585_s0, %s334_s4  ;;  %p401_p13 = pneg %p400_p12 }
  0x17   : > { %349 = vmatpush3.msra.mxu0 %v169_v2  ;;  %v166_v5 = vld [vmem:[%s165_s9] sm:$0xff]  ;;  %s462_s4 = smov [#allocation2]  }
  0x18   : > { %350 = vmatprep.subr.mxu0 %v460_v1  ;;  %s402_s16 = sshll.u32 %s462_s4, 4  ;;  %s403_s16 = int_to_ptr.vmem [resolvable:$false] %s402_s16 }
  0x19   : > { %351 = vmatpush3.msra.mxu0 %v168_v3  ;;  %s404_s5 = scalar_lea.vmem %s403_s16, 256  ;;  %p405_p0 = scmp.lt.s32.totalorder %s271_s25, %s403_s16 }
  0x1a   : > { %352 = vmatprep.subr.mxu0 %v460_v1  ;;  %p406_p1 = scmp.lt.s32.totalorder %s404_s5, %s398_s30 }
  0x1b   : > { %353 = vmatpush3.msra.mxu0 %v167_v4 }
  0x1c   : > { %355 = vmatmul.mubr.msk.f32.vlgmr.msra.gmra.mxu0 %vm171_vm1, %v166_v5  ;;  %p407_p2 = por %p406_p1, %p405_p0 }
  0x1e   : > { %p408_p3 = pnand %p407_p2, %p401_p13 }
  0xdc   : > { %v241_v6 = vpop.f32.mrf.mxu0 }
  0xdd   : > { %v246_v8 = vadd.f32 %v241_v6, %v166_v5 }
  0xde   : > { %v356_v9 = vpop.f32.mrf.mxu0 }
  0xdf   : > { %v253_v10 = vadd.f32 %v336_v7, %v246_v8 }
  0xe1   : > { %255 = vst.msk [vmem:[%s161_s24] sm:$0xff] %vm254_vm2, %v253_v10 }
  0xe2   : > { %411 = shalt.err (!%p408_p3)
}
  0xe3   : > { %s412_s6 = scalar_lea.hbm %s268_s28, 128  ;;  %s416_s9 = scalar_lea.hbm %s588_s3, 256 }
  0xe4   : > { %p413_p4 = scmp.ne.s32.totalorder %s268_s28, %s412_s6  ;;  %p417_p9 = scmp.lt.s32.totalorder %s268_s28, %s588_s3 }
  0xe5   : > { %p418_p10 = scmp.lt.s32.totalorder %s416_s9, %s412_s6 }
  0xe6   : > { %p414_p7 = pnand %p413_p4, %p521_p5 }
  0xe7   : > { %p419_p11 = por %p418_p10, %p417_p9 }
  0xe8   : > { %p415_p8 = pneg %p414_p7 }
  0xea   : > { %p420_p12 = pnand %p419_p11, %p415_p8 }
  0xec   : > { %423 = shalt.err (!%p420_p12)
}
  0xed   : > { %357 = dma.vmem_to_hbm [thread:$0]  (%p521_p5), %s271_s25, 128, %s268_s28, %s257_s29  }
  0xee PF: > { %p363_p13 = scmp.ge.s32.totalorder %s458_s15, 2  ;;  %s282_s17 = sand.u32 1, %s446_s12  }
  0xef   : > { %s283_s19 = scalar_lea.sflag [#allocation3], %s282_s17 }
  0xf0   : > { %p360_p0 = pnand %p363_p13, %p525_p6 }
  0xf2   : > { %p361_p1 = pneg %p360_p0 }
  0xf4   : > { %441 = dma.done.wait (%p361_p1), %s283_s19, 128  }
  0xf5   : > { %443 = vsyncadd (%p361_p1), %s283_s19, 4294967168  ;;  %p13_p2 = scmp.ge.s32.totalorder %s508_s18, 4   ;;  %s591_s12 = smov %s450_s13 }
  0xf6   : > { %s592_s13 = smov %s454_s14  ;;  %s593_s14 = smov %s519_s21 }
  0xf7   : > { %s594_s15 = smov %s508_s18  ;;  %15 = sbr.rel (!%p13_p2) target bundleno = 3 (0x3), region = 67 }
  0xfc   :  { %288 = vsyncpa [#allocation3], 1 }
  0xfd   :  { %290 = vsyncpa [#allocation3 + $0x1], 1 }

</bundles_post_ra>
